<compile_context>
chip_gen: v6e
topology: v6e:2x2x1
jax: 0.10.0
libtpu: 0.0.40
codegen_flags: <defaults>
</compile_context>

<pallas_src>
import math
import numpy as np
import jax
import jax.numpy as jnp
from jax import lax
from jax.experimental import pallas as pl
from jax.experimental.pallas import tpu as pltpu

EPS = 1e-5
NEG_SLOPE = 0.01
PAD = 2          # unified padded-grid margin (= conv2's padding, the largest in the net)


# ---------------- fused Pallas kernel ----------------

def _build_fused_kernel(H, W, C1, C2, WP, L, SPAN, LIN, GUARD, pad1):
    ic_scale = 1.0 / math.sqrt(1.0 + EPS)   # IC-layer BN (eval)

    def kernel(xe_ref, m1_ref, m2_ref, w1_ref, b1_ref, w2_ref, b2_ref, band_ref, o_ref):
        x = xe_ref[0]                                        # (Cin, GUARD + L + GUARD)

        # stage 1: conv1 + BN1 + LeakyReLU, computed over the full padded grid
        acc1 = jnp.zeros((C1, L), jnp.float32)
        for t in range(9):
            off = GUARD + (t // 3 - pad1) * WP + (t % 3 - pad1)
            acc1 = acc1 + jnp.dot(w1_ref[t], x[:, off:off + L],
                                  preferred_element_type=jnp.float32)
        y1 = acc1 + b1_ref[...]
        y1 = jnp.where(y1 > 0, y1, NEG_SLOPE * y1)
        y1 = y1 * m1_ref[...]        # zero the pad ring so conv2 sees true zero padding

        # stage 2: conv2 (dilation 2, pad 2) + BN2 + LeakyReLU over the interior span
        acc2 = jnp.zeros((C2, LIN), jnp.float32)
        for t in range(9):
            off = SPAN + (t // 3 - 1) * 2 * WP + (t % 3 - 1) * 2
            acc2 = acc2 + jnp.dot(w2_ref[t], y1[:, off:off + LIN],
                                  preferred_element_type=jnp.float32)
        y2 = acc2 + b2_ref[...]
        y2 = jnp.where(y2 > 0, y2, NEG_SLOPE * y2)
        y2 = y2 * m2_ref[...]        # zero the (discarded) pad columns inside the span

        # stage 3: ECA channel gate + IC layer (BN eval; dropout = identity)
        pooled = jnp.sum(y2, axis=1, keepdims=True) * (1.0 / (H * W))       # (C2, 1)
        gate = jax.nn.sigmoid(jnp.dot(band_ref[...], pooled,
                                      preferred_element_type=jnp.float32))  # (C2, 1)
        o_ref[0] = (y2 * gate * ic_scale).astype(o_ref.dtype)

    return kernel


# ---------------- wrapper (layout prep + pallas_call) ----------------

def mini_model_forward(x, params, *, pad1=1):
    """x: (N, Cin, H, W) NCHW float32; returns (N, C2, H, W)."""
    w1, b1, w2, b2, eca_w = params
    N, Cin, H, W = x.shape
    C1, C2 = w1.shape[0], w2.shape[0]
    bn_s = 1.0 / math.sqrt(1.0 + EPS)        # gamma / sqrt(running_var + eps)

    WP, HP = W + 2 * PAD, H + 2 * PAD
    L = HP * WP                               # flattened unified-grid length
    SPAN = PAD * WP + PAD                     # flat index of the first valid pixel
    LIN = (H - 1) * WP + W                    # contiguous span covering all valid pixels
    GUARD = pad1 * WP + pad1 + 8              # flat zero guard so conv1 taps are pure slices

    # place x on the zero-padded unified grid, flatten spatially, add flat guards
    xg = jnp.pad(x.astype(jnp.float32), ((0, 0), (0, 0), (PAD, PAD), (PAD, PAD)))
    xe = jnp.pad(xg.reshape(N, Cin, L), ((0, 0), (0, 0), (GUARD, GUARD)))
    LX = L + 2 * GUARD

    # fold BN (eval) into conv weights/biases; reorder to (tap, Cout, Cin)
    w1t = (w1.astype(jnp.float32) * bn_s).transpose(2, 3, 0, 1).reshape(9, C1, Cin)
    b1c = (b1.astype(jnp.float32) * bn_s).reshape(C1, 1)
    w2t = (w2.astype(jnp.float32) * bn_s).transpose(2, 3, 0, 1).reshape(9, C2, C1)
    b2c = (b2.astype(jnp.float32) * bn_s).reshape(C2, 1)

    # ECA banded channel-conv matrix (trace-time constant, C2 x C2 = 8x8 here)
    ke = int(eca_w.shape[0])
    pe = (ke - 1) // 2
    band = sum(eca_w[j].astype(jnp.float32) * jnp.eye(C2, k=j - pe, dtype=jnp.float32)
               for j in range(ke))

    # static validity masks for the flattened grid / interior span (pure numpy)
    gy, gx = np.arange(L) // WP, np.arange(L) % WP
    m1 = jnp.asarray(((gy >= PAD) & (gy < PAD + H) & (gx >= PAD) & (gx < PAD + W))
                     .astype(np.float32).reshape(1, L))
    sx = (np.arange(LIN) + SPAN) % WP
    m2 = jnp.asarray(((sx >= PAD) & (sx < PAD + W)).astype(np.float32).reshape(1, LIN))

    kernel = _build_fused_kernel(H, W, C1, C2, WP, L, SPAN, LIN, GUARD, pad1)

    out = pl.pallas_call(
        kernel,
        out_shape=jax.ShapeDtypeStruct((N, C2, LIN), jnp.float32),
        grid_spec=pltpu.PrefetchScalarGridSpec(
            num_scalar_prefetch=0,
            grid=(N,),
            in_specs=[
                pl.BlockSpec((1, Cin, LX), lambda n: (n, 0, 0)),
                pl.BlockSpec((1, L), lambda n: (0, 0)),
                pl.BlockSpec((1, LIN), lambda n: (0, 0)),
                pl.BlockSpec((9, C1, Cin), lambda n: (0, 0, 0)),
                pl.BlockSpec((C1, 1), lambda n: (0, 0)),
                pl.BlockSpec((9, C2, C1), lambda n: (0, 0, 0)),
                pl.BlockSpec((C2, 1), lambda n: (0, 0)),
                pl.BlockSpec((C2, C2), lambda n: (0, 0)),
            ],
            out_specs=pl.BlockSpec((1, C2, LIN), lambda n: (n, 0, 0)),
        ),
        compiler_params=pltpu.CompilerParams(dimension_semantics=("parallel",)),
    )(xe, m1, m2, w1t, b1c, w2t, b2c, band)

    # unpack lane-dense (N, C2, span) back to NCHW (pad tail, reshape, crop pad columns)
    out = jnp.pad(out, ((0, 0), (0, 0), (0, WP - W)))
    return out.reshape(N, C2, H, WP)[:, :, :, :W]


# ---------------- Pure-JAX reference (for self-check) ----------------

def ref_forward(x, w1, b1, w2, b2, eca_w):
    dn = ("NCHW", "OIHW", "NCHW")
    y = lax.conv_general_dilated(x, w1, (1, 1), [(1, 1), (1, 1)], dimension_numbers=dn)
    y = y + b1[None, :, None, None]
    y = y / jnp.sqrt(1.0 + EPS)
    y = jnp.where(y > 0, y, NEG_SLOPE * y)
    y = lax.conv_general_dilated(y, w2, (1, 1), [(2, 2), (2, 2)],
                                 rhs_dilation=(2, 2), dimension_numbers=dn)
    y = y + b2[None, :, None, None]
    y = y / jnp.sqrt(1.0 + EPS)
    y = jnp.where(y > 0, y, NEG_SLOPE * y)
    # ECA
    pooled = y.mean(axis=(2, 3))                     # (N, C)
    K = eca_w.shape[0]
    pad = (K - 1) // 2
    C = pooled.shape[1]
    pp = jnp.pad(pooled, ((0, 0), (pad, pad)))
    conv_out = sum(eca_w[j] * pp[:, j:j + C] for j in range(K))
    attn = jax.nn.sigmoid(conv_out)
    y = y * attn[:, :, None, None]
    # IC layer: BN eval + dropout identity
    y = y / jnp.sqrt(1.0 + EPS)
    return y


if __name__ == "__main__":
    key = jax.random.PRNGKey(0)
    kx, kw1, kw2, kw3 = jax.random.split(key, 4)

    # module config: n_channel=8, in_channel=4, kernel_size=3, padding=1, groups=1
    N, Cin, H, W = 2, 4, 16, 16
    n_channel = 8
    C1, C2 = n_channel // 2, n_channel

    x = jax.random.normal(kx, (N, Cin, H, W), jnp.float32)

    # kaiming_normal(fan_out, leaky_relu a=0.01)
    gain = math.sqrt(2.0 / (1.0 + NEG_SLOPE ** 2))
    w1 = jax.random.normal(kw1, (C1, Cin, 3, 3), jnp.float32) * (gain / math.sqrt(C1 * 9))
    b1 = jnp.zeros((C1,), jnp.float32)
    w2 = jax.random.normal(kw2, (C2, C1, 3, 3), jnp.float32) * (gain / math.sqrt(C2 * 9))
    b2 = jnp.zeros((C2,), jnp.float32)

    # ECA kernel size from the module's formula (channels=8 -> k=3)
    ks = int(abs((math.log2(n_channel) + 1.0) / 2.0))
    ks = ks if ks % 2 else ks + 1
    eca_w = jax.random.normal(kw3, (ks,), jnp.float32) * 0.3

    params = (w1, b1, w2, b2, eca_w)
    out = jax.jit(mini_model_forward)(x, params)
    out = jax.block_until_ready(out)

    ref = ref_forward(x, w1, b1, w2, b2, eca_w)
    assert out.shape == (N, C2, H, W), out.shape
    err = float(jnp.max(jnp.abs(out - ref)))
    if err < 5e-4:
        print("KERNEL_OK")
    else:
        raise AssertionError(f"mismatch vs reference, max abs err = {err}")
</pallas_src>

<mosaic_0001>
module attributes {stable_mosaic.version = 11 : i64} {
  func.func @kernel(%arg0: i32, %arg1: memref<1x4x458xf32, #tpu.memory_space<vmem>>, %arg2: memref<1x400xf32, #tpu.memory_space<vmem>>, %arg3: memref<1x316xf32, #tpu.memory_space<vmem>>, %arg4: memref<9x4x4xf32, #tpu.memory_space<vmem>>, %arg5: memref<4x1xf32, #tpu.memory_space<vmem>>, %arg6: memref<9x8x4xf32, #tpu.memory_space<vmem>>, %arg7: memref<8x1xf32, #tpu.memory_space<vmem>>, %arg8: memref<8x8xf32, #tpu.memory_space<vmem>>, %arg9: memref<1x8x316xf32, #tpu.memory_space<vmem>>) attributes {dimension_semantics = [#tpu.dimension_semantics<parallel>], iteration_bounds = array<i64: 2>, scalar_prefetch = 0 : i64, scratch_operands = 0 : i64, tpu.core_type = #tpu.core_type<tc>, window_params = [{transform_indices = @transform_0, window_bounds = array<i64: 1, 4, 458>}, {pipeline_mode = #tpu.pipeline_mode<synchronous>, transform_indices = @transform_1, window_bounds = array<i64: 1, 400>}, {pipeline_mode = #tpu.pipeline_mode<synchronous>, transform_indices = @transform_2, window_bounds = array<i64: 1, 316>}, {pipeline_mode = #tpu.pipeline_mode<synchronous>, transform_indices = @transform_3, window_bounds = array<i64: 9, 4, 4>}, {pipeline_mode = #tpu.pipeline_mode<synchronous>, transform_indices = @transform_4, window_bounds = array<i64: 4, 1>}, {pipeline_mode = #tpu.pipeline_mode<synchronous>, transform_indices = @transform_5, window_bounds = array<i64: 9, 8, 4>}, {pipeline_mode = #tpu.pipeline_mode<synchronous>, transform_indices = @transform_6, window_bounds = array<i64: 8, 1>}, {pipeline_mode = #tpu.pipeline_mode<synchronous>, transform_indices = @transform_7, window_bounds = array<i64: 8, 8>}, {transform_indices = @transform_8, window_bounds = array<i64: 1, 8, 316>}]} {
    %c0 = arith.constant 0 : index
    %c0_0 = arith.constant 0 : index
    %c0_1 = arith.constant 0 : index
    %0 = vector.load %arg1[%c0, %c0_0, %c0_1] : memref<1x4x458xf32, #tpu.memory_space<vmem>>, vector<1x4x458xf32>
    %1 = vector.shape_cast %0 : vector<1x4x458xf32> to vector<4x458xf32>
    %cst = arith.constant 0.000000e+00 : f32
    %2 = vector.broadcast %cst : f32 to vector<4x400xf32>
    %c0_2 = arith.constant 0 : index
    %c0_3 = arith.constant 0 : index
    %c0_4 = arith.constant 0 : index
    %3 = vector.load %arg4[%c0_2, %c0_3, %c0_4] : memref<9x4x4xf32, #tpu.memory_space<vmem>>, vector<1x4x4xf32>
    %4 = vector.shape_cast %3 : vector<1x4x4xf32> to vector<4x4xf32>
    %5 = vector.extract_strided_slice %1 {offsets = [0, 8], sizes = [4, 400], strides = [1, 1]} : vector<4x458xf32> to vector<4x400xf32>
    %cst_5 = arith.constant dense<0.000000e+00> : vector<4x400xf32>
    %6 = tpu.matmul %4, %5, %cst_5 {dimension_numbers = #tpu.dot_dimension_numbers<[1], [0], [0], [1], [0, 0, 1, 1], [], []>} : vector<4x4xf32>, vector<4x400xf32>, vector<4x400xf32> -> vector<4x400xf32>
    %7 = arith.addf %2, %6 : vector<4x400xf32>
    %c1 = arith.constant 1 : index
    %c0_6 = arith.constant 0 : index
    %c0_7 = arith.constant 0 : index
    %8 = vector.load %arg4[%c1, %c0_6, %c0_7] : memref<9x4x4xf32, #tpu.memory_space<vmem>>, vector<1x4x4xf32>
    %9 = vector.shape_cast %8 : vector<1x4x4xf32> to vector<4x4xf32>
    %10 = vector.extract_strided_slice %1 {offsets = [0, 9], sizes = [4, 400], strides = [1, 1]} : vector<4x458xf32> to vector<4x400xf32>
    %cst_8 = arith.constant dense<0.000000e+00> : vector<4x400xf32>
    %11 = tpu.matmul %9, %10, %cst_8 {dimension_numbers = #tpu.dot_dimension_numbers<[1], [0], [0], [1], [0, 0, 1, 1], [], []>} : vector<4x4xf32>, vector<4x400xf32>, vector<4x400xf32> -> vector<4x400xf32>
    %12 = arith.addf %7, %11 : vector<4x400xf32>
    %c2 = arith.constant 2 : index
    %c0_9 = arith.constant 0 : index
    %c0_10 = arith.constant 0 : index
    %13 = vector.load %arg4[%c2, %c0_9, %c0_10] : memref<9x4x4xf32, #tpu.memory_space<vmem>>, vector<1x4x4xf32>
    %14 = vector.shape_cast %13 : vector<1x4x4xf32> to vector<4x4xf32>
    %15 = vector.extract_strided_slice %1 {offsets = [0, 10], sizes = [4, 400], strides = [1, 1]} : vector<4x458xf32> to vector<4x400xf32>
    %cst_11 = arith.constant dense<0.000000e+00> : vector<4x400xf32>
    %16 = tpu.matmul %14, %15, %cst_11 {dimension_numbers = #tpu.dot_dimension_numbers<[1], [0], [0], [1], [0, 0, 1, 1], [], []>} : vector<4x4xf32>, vector<4x400xf32>, vector<4x400xf32> -> vector<4x400xf32>
    %17 = arith.addf %12, %16 : vector<4x400xf32>
    %c3 = arith.constant 3 : index
    %c0_12 = arith.constant 0 : index
    %c0_13 = arith.constant 0 : index
    %18 = vector.load %arg4[%c3, %c0_12, %c0_13] : memref<9x4x4xf32, #tpu.memory_space<vmem>>, vector<1x4x4xf32>
    %19 = vector.shape_cast %18 : vector<1x4x4xf32> to vector<4x4xf32>
    %20 = vector.extract_strided_slice %1 {offsets = [0, 28], sizes = [4, 400], strides = [1, 1]} : vector<4x458xf32> to vector<4x400xf32>
    %cst_14 = arith.constant dense<0.000000e+00> : vector<4x400xf32>
    %21 = tpu.matmul %19, %20, %cst_14 {dimension_numbers = #tpu.dot_dimension_numbers<[1], [0], [0], [1], [0, 0, 1, 1], [], []>} : vector<4x4xf32>, vector<4x400xf32>, vector<4x400xf32> -> vector<4x400xf32>
    %22 = arith.addf %17, %21 : vector<4x400xf32>
    %c4 = arith.constant 4 : index
    %c0_15 = arith.constant 0 : index
    %c0_16 = arith.constant 0 : index
    %23 = vector.load %arg4[%c4, %c0_15, %c0_16] : memref<9x4x4xf32, #tpu.memory_space<vmem>>, vector<1x4x4xf32>
    %24 = vector.shape_cast %23 : vector<1x4x4xf32> to vector<4x4xf32>
    %25 = vector.extract_strided_slice %1 {offsets = [0, 29], sizes = [4, 400], strides = [1, 1]} : vector<4x458xf32> to vector<4x400xf32>
    %cst_17 = arith.constant dense<0.000000e+00> : vector<4x400xf32>
    %26 = tpu.matmul %24, %25, %cst_17 {dimension_numbers = #tpu.dot_dimension_numbers<[1], [0], [0], [1], [0, 0, 1, 1], [], []>} : vector<4x4xf32>, vector<4x400xf32>, vector<4x400xf32> -> vector<4x400xf32>
    %27 = arith.addf %22, %26 : vector<4x400xf32>
    %c5 = arith.constant 5 : index
    %c0_18 = arith.constant 0 : index
    %c0_19 = arith.constant 0 : index
    %28 = vector.load %arg4[%c5, %c0_18, %c0_19] : memref<9x4x4xf32, #tpu.memory_space<vmem>>, vector<1x4x4xf32>
    %29 = vector.shape_cast %28 : vector<1x4x4xf32> to vector<4x4xf32>
    %30 = vector.extract_strided_slice %1 {offsets = [0, 30], sizes = [4, 400], strides = [1, 1]} : vector<4x458xf32> to vector<4x400xf32>
    %cst_20 = arith.constant dense<0.000000e+00> : vector<4x400xf32>
    %31 = tpu.matmul %29, %30, %cst_20 {dimension_numbers = #tpu.dot_dimension_numbers<[1], [0], [0], [1], [0, 0, 1, 1], [], []>} : vector<4x4xf32>, vector<4x400xf32>, vector<4x400xf32> -> vector<4x400xf32>
    %32 = arith.addf %27, %31 : vector<4x400xf32>
    %c6 = arith.constant 6 : index
    %c0_21 = arith.constant 0 : index
    %c0_22 = arith.constant 0 : index
    %33 = vector.load %arg4[%c6, %c0_21, %c0_22] : memref<9x4x4xf32, #tpu.memory_space<vmem>>, vector<1x4x4xf32>
    %34 = vector.shape_cast %33 : vector<1x4x4xf32> to vector<4x4xf32>
    %35 = vector.extract_strided_slice %1 {offsets = [0, 48], sizes = [4, 400], strides = [1, 1]} : vector<4x458xf32> to vector<4x400xf32>
    %cst_23 = arith.constant dense<0.000000e+00> : vector<4x400xf32>
    %36 = tpu.matmul %34, %35, %cst_23 {dimension_numbers = #tpu.dot_dimension_numbers<[1], [0], [0], [1], [0, 0, 1, 1], [], []>} : vector<4x4xf32>, vector<4x400xf32>, vector<4x400xf32> -> vector<4x400xf32>
    %37 = arith.addf %32, %36 : vector<4x400xf32>
    %c7 = arith.constant 7 : index
    %c0_24 = arith.constant 0 : index
    %c0_25 = arith.constant 0 : index
    %38 = vector.load %arg4[%c7, %c0_24, %c0_25] : memref<9x4x4xf32, #tpu.memory_space<vmem>>, vector<1x4x4xf32>
    %39 = vector.shape_cast %38 : vector<1x4x4xf32> to vector<4x4xf32>
    %40 = vector.extract_strided_slice %1 {offsets = [0, 49], sizes = [4, 400], strides = [1, 1]} : vector<4x458xf32> to vector<4x400xf32>
    %cst_26 = arith.constant dense<0.000000e+00> : vector<4x400xf32>
    %41 = tpu.matmul %39, %40, %cst_26 {dimension_numbers = #tpu.dot_dimension_numbers<[1], [0], [0], [1], [0, 0, 1, 1], [], []>} : vector<4x4xf32>, vector<4x400xf32>, vector<4x400xf32> -> vector<4x400xf32>
    %42 = arith.addf %37, %41 : vector<4x400xf32>
    %c8 = arith.constant 8 : index
    %c0_27 = arith.constant 0 : index
    %c0_28 = arith.constant 0 : index
    %43 = vector.load %arg4[%c8, %c0_27, %c0_28] : memref<9x4x4xf32, #tpu.memory_space<vmem>>, vector<1x4x4xf32>
    %44 = vector.shape_cast %43 : vector<1x4x4xf32> to vector<4x4xf32>
    %45 = vector.extract_strided_slice %1 {offsets = [0, 50], sizes = [4, 400], strides = [1, 1]} : vector<4x458xf32> to vector<4x400xf32>
    %cst_29 = arith.constant dense<0.000000e+00> : vector<4x400xf32>
    %46 = tpu.matmul %44, %45, %cst_29 {dimension_numbers = #tpu.dot_dimension_numbers<[1], [0], [0], [1], [0, 0, 1, 1], [], []>} : vector<4x4xf32>, vector<4x400xf32>, vector<4x400xf32> -> vector<4x400xf32>
    %47 = arith.addf %42, %46 : vector<4x400xf32>
    %c0_30 = arith.constant 0 : index
    %c0_31 = arith.constant 0 : index
    %48 = vector.load %arg5[%c0_30, %c0_31] : memref<4x1xf32, #tpu.memory_space<vmem>>, vector<4x1xf32>
    %49 = vector.broadcast %48 : vector<4x1xf32> to vector<4x400xf32>
    %50 = arith.addf %47, %49 : vector<4x400xf32>
    %cst_32 = arith.constant 0.000000e+00 : f32
    %51 = vector.broadcast %cst_32 : f32 to vector<4x400xf32>
    %52 = arith.cmpf ogt, %50, %51 : vector<4x400xf32>
    %cst_33 = arith.constant 0.00999999977 : f32
    %53 = vector.broadcast %cst_33 : f32 to vector<4x400xf32>
    %54 = arith.mulf %53, %50 : vector<4x400xf32>
    %55 = arith.select %52, %50, %54 : vector<4x400xi1>, vector<4x400xf32>
    %c0_34 = arith.constant 0 : index
    %c0_35 = arith.constant 0 : index
    %56 = vector.load %arg2[%c0_34, %c0_35] : memref<1x400xf32, #tpu.memory_space<vmem>>, vector<1x400xf32>
    %57 = vector.broadcast %56 : vector<1x400xf32> to vector<4x400xf32>
    %58 = arith.mulf %55, %57 : vector<4x400xf32>
    %cst_36 = arith.constant 0.000000e+00 : f32
    %59 = vector.broadcast %cst_36 : f32 to vector<8x316xf32>
    %c0_37 = arith.constant 0 : index
    %c0_38 = arith.constant 0 : index
    %c0_39 = arith.constant 0 : index
    %60 = vector.load %arg6[%c0_37, %c0_38, %c0_39] : memref<9x8x4xf32, #tpu.memory_space<vmem>>, vector<1x8x4xf32>
    %61 = vector.shape_cast %60 : vector<1x8x4xf32> to vector<8x4xf32>
    %62 = vector.extract_strided_slice %58 {offsets = [0, 0], sizes = [4, 316], strides = [1, 1]} : vector<4x400xf32> to vector<4x316xf32>
    %cst_40 = arith.constant dense<0.000000e+00> : vector<8x316xf32>
    %63 = tpu.matmul %61, %62, %cst_40 {dimension_numbers = #tpu.dot_dimension_numbers<[1], [0], [0], [1], [0, 0, 1, 1], [], []>} : vector<8x4xf32>, vector<4x316xf32>, vector<8x316xf32> -> vector<8x316xf32>
    %64 = arith.addf %59, %63 : vector<8x316xf32>
    %c1_41 = arith.constant 1 : index
    %c0_42 = arith.constant 0 : index
    %c0_43 = arith.constant 0 : index
    %65 = vector.load %arg6[%c1_41, %c0_42, %c0_43] : memref<9x8x4xf32, #tpu.memory_space<vmem>>, vector<1x8x4xf32>
    %66 = vector.shape_cast %65 : vector<1x8x4xf32> to vector<8x4xf32>
    %67 = vector.extract_strided_slice %58 {offsets = [0, 2], sizes = [4, 316], strides = [1, 1]} : vector<4x400xf32> to vector<4x316xf32>
    %cst_44 = arith.constant dense<0.000000e+00> : vector<8x316xf32>
    %68 = tpu.matmul %66, %67, %cst_44 {dimension_numbers = #tpu.dot_dimension_numbers<[1], [0], [0], [1], [0, 0, 1, 1], [], []>} : vector<8x4xf32>, vector<4x316xf32>, vector<8x316xf32> -> vector<8x316xf32>
    %69 = arith.addf %64, %68 : vector<8x316xf32>
    %c2_45 = arith.constant 2 : index
    %c0_46 = arith.constant 0 : index
    %c0_47 = arith.constant 0 : index
    %70 = vector.load %arg6[%c2_45, %c0_46, %c0_47] : memref<9x8x4xf32, #tpu.memory_space<vmem>>, vector<1x8x4xf32>
    %71 = vector.shape_cast %70 : vector<1x8x4xf32> to vector<8x4xf32>
    %72 = vector.extract_strided_slice %58 {offsets = [0, 4], sizes = [4, 316], strides = [1, 1]} : vector<4x400xf32> to vector<4x316xf32>
    %cst_48 = arith.constant dense<0.000000e+00> : vector<8x316xf32>
    %73 = tpu.matmul %71, %72, %cst_48 {dimension_numbers = #tpu.dot_dimension_numbers<[1], [0], [0], [1], [0, 0, 1, 1], [], []>} : vector<8x4xf32>, vector<4x316xf32>, vector<8x316xf32> -> vector<8x316xf32>
    %74 = arith.addf %69, %73 : vector<8x316xf32>
    %c3_49 = arith.constant 3 : index
    %c0_50 = arith.constant 0 : index
    %c0_51 = arith.constant 0 : index
    %75 = vector.load %arg6[%c3_49, %c0_50, %c0_51] : memref<9x8x4xf32, #tpu.memory_space<vmem>>, vector<1x8x4xf32>
    %76 = vector.shape_cast %75 : vector<1x8x4xf32> to vector<8x4xf32>
    %77 = vector.extract_strided_slice %58 {offsets = [0, 40], sizes = [4, 316], strides = [1, 1]} : vector<4x400xf32> to vector<4x316xf32>
    %cst_52 = arith.constant dense<0.000000e+00> : vector<8x316xf32>
    %78 = tpu.matmul %76, %77, %cst_52 {dimension_numbers = #tpu.dot_dimension_numbers<[1], [0], [0], [1], [0, 0, 1, 1], [], []>} : vector<8x4xf32>, vector<4x316xf32>, vector<8x316xf32> -> vector<8x316xf32>
    %79 = arith.addf %74, %78 : vector<8x316xf32>
    %c4_53 = arith.constant 4 : index
    %c0_54 = arith.constant 0 : index
    %c0_55 = arith.constant 0 : index
    %80 = vector.load %arg6[%c4_53, %c0_54, %c0_55] : memref<9x8x4xf32, #tpu.memory_space<vmem>>, vector<1x8x4xf32>
    %81 = vector.shape_cast %80 : vector<1x8x4xf32> to vector<8x4xf32>
    %82 = vector.extract_strided_slice %58 {offsets = [0, 42], sizes = [4, 316], strides = [1, 1]} : vector<4x400xf32> to vector<4x316xf32>
    %cst_56 = arith.constant dense<0.000000e+00> : vector<8x316xf32>
    %83 = tpu.matmul %81, %82, %cst_56 {dimension_numbers = #tpu.dot_dimension_numbers<[1], [0], [0], [1], [0, 0, 1, 1], [], []>} : vector<8x4xf32>, vector<4x316xf32>, vector<8x316xf32> -> vector<8x316xf32>
    %84 = arith.addf %79, %83 : vector<8x316xf32>
    %c5_57 = arith.constant 5 : index
    %c0_58 = arith.constant 0 : index
    %c0_59 = arith.constant 0 : index
    %85 = vector.load %arg6[%c5_57, %c0_58, %c0_59] : memref<9x8x4xf32, #tpu.memory_space<vmem>>, vector<1x8x4xf32>
    %86 = vector.shape_cast %85 : vector<1x8x4xf32> to vector<8x4xf32>
    %87 = vector.extract_strided_slice %58 {offsets = [0, 44], sizes = [4, 316], strides = [1, 1]} : vector<4x400xf32> to vector<4x316xf32>
    %cst_60 = arith.constant dense<0.000000e+00> : vector<8x316xf32>
    %88 = tpu.matmul %86, %87, %cst_60 {dimension_numbers = #tpu.dot_dimension_numbers<[1], [0], [0], [1], [0, 0, 1, 1], [], []>} : vector<8x4xf32>, vector<4x316xf32>, vector<8x316xf32> -> vector<8x316xf32>
    %89 = arith.addf %84, %88 : vector<8x316xf32>
    %c6_61 = arith.constant 6 : index
    %c0_62 = arith.constant 0 : index
    %c0_63 = arith.constant 0 : index
    %90 = vector.load %arg6[%c6_61, %c0_62, %c0_63] : memref<9x8x4xf32, #tpu.memory_space<vmem>>, vector<1x8x4xf32>
    %91 = vector.shape_cast %90 : vector<1x8x4xf32> to vector<8x4xf32>
    %92 = vector.extract_strided_slice %58 {offsets = [0, 80], sizes = [4, 316], strides = [1, 1]} : vector<4x400xf32> to vector<4x316xf32>
    %cst_64 = arith.constant dense<0.000000e+00> : vector<8x316xf32>
    %93 = tpu.matmul %91, %92, %cst_64 {dimension_numbers = #tpu.dot_dimension_numbers<[1], [0], [0], [1], [0, 0, 1, 1], [], []>} : vector<8x4xf32>, vector<4x316xf32>, vector<8x316xf32> -> vector<8x316xf32>
    %94 = arith.addf %89, %93 : vector<8x316xf32>
    %c7_65 = arith.constant 7 : index
    %c0_66 = arith.constant 0 : index
    %c0_67 = arith.constant 0 : index
    %95 = vector.load %arg6[%c7_65, %c0_66, %c0_67] : memref<9x8x4xf32, #tpu.memory_space<vmem>>, vector<1x8x4xf32>
    %96 = vector.shape_cast %95 : vector<1x8x4xf32> to vector<8x4xf32>
    %97 = vector.extract_strided_slice %58 {offsets = [0, 82], sizes = [4, 316], strides = [1, 1]} : vector<4x400xf32> to vector<4x316xf32>
    %cst_68 = arith.constant dense<0.000000e+00> : vector<8x316xf32>
    %98 = tpu.matmul %96, %97, %cst_68 {dimension_numbers = #tpu.dot_dimension_numbers<[1], [0], [0], [1], [0, 0, 1, 1], [], []>} : vector<8x4xf32>, vector<4x316xf32>, vector<8x316xf32> -> vector<8x316xf32>
    %99 = arith.addf %94, %98 : vector<8x316xf32>
    %c8_69 = arith.constant 8 : index
    %c0_70 = arith.constant 0 : index
    %c0_71 = arith.constant 0 : index
    %100 = vector.load %arg6[%c8_69, %c0_70, %c0_71] : memref<9x8x4xf32, #tpu.memory_space<vmem>>, vector<1x8x4xf32>
    %101 = vector.shape_cast %100 : vector<1x8x4xf32> to vector<8x4xf32>
    %102 = vector.extract_strided_slice %58 {offsets = [0, 84], sizes = [4, 316], strides = [1, 1]} : vector<4x400xf32> to vector<4x316xf32>
    %cst_72 = arith.constant dense<0.000000e+00> : vector<8x316xf32>
    %103 = tpu.matmul %101, %102, %cst_72 {dimension_numbers = #tpu.dot_dimension_numbers<[1], [0], [0], [1], [0, 0, 1, 1], [], []>} : vector<8x4xf32>, vector<4x316xf32>, vector<8x316xf32> -> vector<8x316xf32>
    %104 = arith.addf %99, %103 : vector<8x316xf32>
    %c0_73 = arith.constant 0 : index
    %c0_74 = arith.constant 0 : index
    %105 = vector.load %arg7[%c0_73, %c0_74] : memref<8x1xf32, #tpu.memory_space<vmem>>, vector<8x1xf32>
    %106 = vector.broadcast %105 : vector<8x1xf32> to vector<8x316xf32>
    %107 = arith.addf %104, %106 : vector<8x316xf32>
    %cst_75 = arith.constant 0.000000e+00 : f32
    %108 = vector.broadcast %cst_75 : f32 to vector<8x316xf32>
    %109 = arith.cmpf ogt, %107, %108 : vector<8x316xf32>
    %cst_76 = arith.constant 0.00999999977 : f32
    %110 = vector.broadcast %cst_76 : f32 to vector<8x316xf32>
    %111 = arith.mulf %110, %107 : vector<8x316xf32>
    %112 = arith.select %109, %107, %111 : vector<8x316xi1>, vector<8x316xf32>
    %c0_77 = arith.constant 0 : index
    %c0_78 = arith.constant 0 : index
    %113 = vector.load %arg3[%c0_77, %c0_78] : memref<1x316xf32, #tpu.memory_space<vmem>>, vector<1x316xf32>
    %114 = vector.broadcast %113 : vector<1x316xf32> to vector<8x316xf32>
    %115 = arith.mulf %112, %114 : vector<8x316xf32>
    %cst_79 = arith.constant dense<0.000000e+00> : vector<8xf32>
    %116 = vector.multi_reduction <add>, %115, %cst_79 [1] : vector<8x316xf32> to vector<8xf32>
    %117 = vector.shape_cast %116 : vector<8xf32> to vector<8x1xf32>
    %cst_80 = arith.constant 3.906250e-03 : f32
    %118 = vector.broadcast %cst_80 : f32 to vector<8x1xf32>
    %119 = arith.mulf %117, %118 : vector<8x1xf32>
    %c0_81 = arith.constant 0 : index
    %c0_82 = arith.constant 0 : index
    %120 = vector.load %arg8[%c0_81, %c0_82] : memref<8x8xf32, #tpu.memory_space<vmem>>, vector<8x8xf32>
    %cst_83 = arith.constant dense<0.000000e+00> : vector<8x1xf32>
    %121 = tpu.matmul %120, %119, %cst_83 {dimension_numbers = #tpu.dot_dimension_numbers<[1], [0], [0], [1], [0, 0, 1, 1], [], []>} : vector<8x8xf32>, vector<8x1xf32>, vector<8x1xf32> -> vector<8x1xf32>
    %122 = arith.negf %121 : vector<8x1xf32>
    %123 = math.exp %122 : vector<8x1xf32>
    %cst_84 = arith.constant 1.000000e+00 : f32
    %124 = vector.broadcast %cst_84 : f32 to vector<8x1xf32>
    %125 = arith.addf %124, %123 : vector<8x1xf32>
    %126 = arith.divf %124, %125 : vector<8x1xf32>
    %127 = vector.broadcast %126 : vector<8x1xf32> to vector<8x316xf32>
    %128 = arith.mulf %115, %127 : vector<8x316xf32>
    %cst_85 = arith.constant 0.999994993 : f32
    %129 = vector.broadcast %cst_85 : f32 to vector<8x316xf32>
    %130 = arith.mulf %128, %129 : vector<8x316xf32>
    %c0_86 = arith.constant 0 : index
    %c0_87 = arith.constant 0 : index
    %c0_88 = arith.constant 0 : index
    %131 = vector.load %arg9[%c0_86, %c0_87, %c0_88] : memref<1x8x316xf32, #tpu.memory_space<vmem>>, vector<1x8x316xf32>
    %132 = vector.shape_cast %131 : vector<1x8x316xf32> to vector<8x316xf32>
    %133 = vector.shape_cast %130 : vector<8x316xf32> to vector<1x8x316xf32>
    tpu.vector_store %arg9[%c0_86, %c0_87, %c0_88], %133 {strides = array<i32>} : memref<1x8x316xf32, #tpu.memory_space<vmem>>, vector<1x8x316xf32>,
    return
  }
  func.func @transform_0(%arg0: i32) -> (i32, i32, i32) {
    %c0_i32 = arith.constant 0 : i32
    %c0_i32_0 = arith.constant 0 : i32
    %c0_i32_1 = arith.constant 0 : i32
    return %arg0, %c0_i32, %c0_i32_0 : i32, i32, i32
  }
  func.func @transform_1(%arg0: i32) -> (i32, i32) {
    %c0_i32 = arith.constant 0 : i32
    %c0_i32_0 = arith.constant 0 : i32
    %c0_i32_1 = arith.constant 0 : i32
    return %c0_i32, %c0_i32_0 : i32, i32
  }
  func.func @transform_2(%arg0: i32) -> (i32, i32) {
    %c0_i32 = arith.constant 0 : i32
    %c0_i32_0 = arith.constant 0 : i32
    %c0_i32_1 = arith.constant 0 : i32
    return %c0_i32, %c0_i32_0 : i32, i32
  }
  func.func @transform_3(%arg0: i32) -> (i32, i32, i32) {
    %c0_i32 = arith.constant 0 : i32
    %c0_i32_0 = arith.constant 0 : i32
    %c0_i32_1 = arith.constant 0 : i32
    %c0_i32_2 = arith.constant 0 : i32
    return %c0_i32, %c0_i32_0, %c0_i32_1 : i32, i32, i32
  }
  func.func @transform_4(%arg0: i32) -> (i32, i32) {
    %c0_i32 = arith.constant 0 : i32
    %c0_i32_0 = arith.constant 0 : i32
    %c0_i32_1 = arith.constant 0 : i32
    return %c0_i32, %c0_i32_0 : i32, i32
  }
  func.func @transform_5(%arg0: i32) -> (i32, i32, i32) {
    %c0_i32 = arith.constant 0 : i32
    %c0_i32_0 = arith.constant 0 : i32
    %c0_i32_1 = arith.constant 0 : i32
    %c0_i32_2 = arith.constant 0 : i32
    return %c0_i32, %c0_i32_0, %c0_i32_1 : i32, i32, i32
  }
  func.func @transform_6(%arg0: i32) -> (i32, i32) {
    %c0_i32 = arith.constant 0 : i32
    %c0_i32_0 = arith.constant 0 : i32
    %c0_i32_1 = arith.constant 0 : i32
    return %c0_i32, %c0_i32_0 : i32, i32
  }
  func.func @transform_7(%arg0: i32) -> (i32, i32) {
    %c0_i32 = arith.constant 0 : i32
    %c0_i32_0 = arith.constant 0 : i32
    %c0_i32_1 = arith.constant 0 : i32
    return %c0_i32, %c0_i32_0 : i32, i32
  }
  func.func @transform_8(%arg0: i32) -> (i32, i32, i32) {
    %c0_i32 = arith.constant 0 : i32
    %c0_i32_0 = arith.constant 0 : i32
    %c0_i32_1 = arith.constant 0 : i32
    return %arg0, %c0_i32, %c0_i32_0 : i32, i32, i32
  }
}

</mosaic_0001>

<bundles_post_ra>
// kernel: mini_model_forward.1
= control target key start
LH: loop header
LB: loop body
LE: loop exit
PB: predicated region body
PF: predicated region fallthrough
CT: control target
= control target key end

     0   :  { %s3868_s27 = smov 0   ;;  %s4195_s0 = inlined_call_operand.vmem [shape: f32[2,4,458], index: 0, kind: input, shape index: {}]   ;;  %s4196_s1 = inlined_call_operand.vmem [shape: f32[1,400], index: 1, kind: input, shape index: {}]   ;;  %s4197_s2 = inlined_call_operand.vmem [shape: f32[1,316], index: 2, kind: input, shape index: {}]   ;;  %s4198_s3 = inlined_call_operand.vmem [shape: f32[9,4,4], index: 3, kind: input, shape index: {}]   ;;  %s4199_s4 = inlined_call_operand.vmem [shape: f32[4,1], index: 4, kind: input, shape index: {}]   ;;  %s4200_s5 = inlined_call_operand.vmem [shape: f32[9,8,4], index: 5, kind: input, shape index: {}]   ;;  %s4201_s6 = inlined_call_operand.vmem [shape: f32[8,1], index: 6, kind: input, shape index: {}]   ;;  %s4202_s7 = inlined_call_operand.vmem [shape: f32[8,8], index: 7, kind: input, shape index: {}]   ;;  %s4203_s8 = inlined_call_operand.vmem [shape: f32[2,8,316], index: 8, kind: output, shape index: {}]  }
   0x1 LB: > { %s3560_s28 = sadd.s32 4294967295, %s3801_s27   ;;  %p3564_p0 = scmp.ge.s32.totalorder %s3801_s27, 1  ;;  %s3801_s27 = sphi %s3868_s27, %s18_s27  }
   0x2   : > { %p262_p1 = scmp.lt.s32.totalorder %s3801_s27, 3 }
   0x4   : > { %p263_p2 = pnand %p3564_p0, %p262_p1 }
   0x5   : > { %p296_p3 = scmp.lt.s32.totalorder (!%p263_p2), %s3560_s28, 1  ;;  %s3804_s11 = smov (!%p263_p2), 119  }
   0x6   : > { %266 = sbr.rel (%p263_p2) target bundleno = 1275 (0x4fb), region = 52  ;;  %s3805_s12 = smov (!%p263_p2), 120  }
   0x7   : > { %s3806_s13 = smov (!%p263_p2), 118   ;;  %s3807_s14 = smov (!%p263_p2), 100  }
   0x8   : > { %s3808_s15 = smov (!%p263_p2), 99   ;;  %s3809_s16 = smov (!%p263_p2), 98  }
   0x9   : > { %s3810_s17 = smov (!%p263_p2), 80   ;;  %s3811_s18 = smov (!%p263_p2), 79  }
   0xa   : > { %s3813_s19 = smov (!%p263_p2), 78   ;;  %s3815_s22 = smov (!%p263_p2), 124  }
   0xb   : > { %s4205_s28 = smov (!%p296_p3, %s3560_s28), 1  ;;  %v3803_v2 = vmov 0.0   ;;  %v3812_v5 = vmov 0   ;;  %v1844_v6 = vld [vmem:[%s4199_s4] sm:$0xf]  ;;  %vm323_vm0 = vcmask 973824  }
   0xc   : > { %s3687_s29 = sshll.u32 %s4205_s28, 4  ;;  %475 = vmatprep.mubr.f32.mxu1 %v3803_v2  ;;  %404 = vmatprep.mubr.f32.mxu0 %v3803_v2  ;;  %vm331_vm1 = vcmask 1043456   ;;  %vm490_vm2 = vcmask 982016   ;;  %v3568_v13 = vld [vmem:[%s4198_s3 + $0x4] sm:$0xf]  ;;  %vm327_vm3 = vcmask 31744  }
   0xd   : > { %s300_s10 = scalar_lea.vmem %s4195_s0, %s3687_s29  ;;  %3787 = vset.pattern.permute.xlu0 %v3812_v5  ;;  %3788 = vset.pattern.permute.xlu1 %v3812_v5  ;;  %v308_v20 = vld [vmem:[%s4198_s3] sm:$0xf]  ;;  %vm657_vm4 = vcmask 965632   ;;  %v3581_v28 = vld [vmem:[%s4198_s3 + $0x8] sm:$0xf]  ;;  %vm828_vm5 = vcmask 818176  }
   0xe   : > { %v307_v0 = vld [vmem:[%s300_s10 + $0x8] sm:$0xff]  ;;  %v306_v1 = vld [vmem:[%s300_s10] sm:$0xff]  ;;  %vm999_vm6 = vcmask 809984   ;;  %v3595_v44 = vld [vmem:[%s4198_s3 + $0x10] sm:$0xf]  ;;  %vm1170_vm7 = vcmask 801792  }
   0xf   : > { %319 = vrot.lane.b32.xlu0 %v307_v0, %s3804_s11  ;;  %315 = vrot.lane.b32.xlu1 %v306_v1, %s3804_s11  ;;  %v313_v3 = vcombine.high %v306_v1, %v306_v1  ;;  %v314_v4 = vcombine.high %v307_v0, %v307_v0  ;;  %v3588_v36 = vld [vmem:[%s4198_s3 + $0xc] sm:$0xf]  ;;  %v3602_v52 = vld [vmem:[%s4198_s3 + $0x14] sm:$0xf]  ;;  %vm1341_vm8 = vcmask 654336   ;;  %vm1512_vm9 = vcmask 646144  }
  0x10   : > { %v3609_v60 = vld [vmem:[%s4198_s3 + $0x18] sm:$0xf]  ;;  %v3616_v5 = vld [vmem:[%s4198_s3 + $0x1c] sm:$0xf]  ;;  %vm1683_vm10 = vcmask 637952   ;;  %vm3814_vm11 = vmmov 0  }
  0x11   : > { %s3816_s23 = smov 126   ;;  %s3817_s24 = smov 86  }
  0x12   : > { %s3818_s25 = smov 88   ;;  %s3819_s26 = smov 84  }
  0x13   : > { %486 = vrot.lane.b32.xlu1 %v307_v0, %s3805_s12  ;;  %317 = vrot.lane.b32.xlu0 %v313_v3, %s3804_s11  ;;  %s3820_s29 = smov 48   ;;  %s3821_s30 = smov 46  }
  0x14   : > { %s3822_s9 = smov 44  }
  0x17   : > { %321 = vrot.lane.b32.xlu1 %v314_v4, %s3804_s11  ;;  %484 = vrot.lane.b32.xlu0 %v313_v3, %s3805_s12 }
  0x1b   : > { %488 = vrot.lane.b32.xlu1 %v314_v4, %s3805_s12  ;;  %482 = vrot.lane.b32.xlu0 %v306_v1, %s3805_s12 }
  0x1f   : > { %653 = vrot.lane.b32.xlu1 %v307_v0, %s3806_s13  ;;  %651 = vrot.lane.b32.xlu0 %v313_v3, %s3806_s13 }
  0x23   : > { %655 = vrot.lane.b32.xlu1 %v314_v4, %s3806_s13  ;;  %649 = vrot.lane.b32.xlu0 %v306_v1, %s3806_s13 }
  0x27   : > { %824 = vrot.lane.b32.xlu1 %v307_v0, %s3807_s14  ;;  %822 = vrot.lane.b32.xlu0 %v313_v3, %s3807_s14 }
  0x2b   : > { %826 = vrot.lane.b32.xlu1 %v314_v4, %s3807_s14  ;;  %820 = vrot.lane.b32.xlu0 %v306_v1, %s3807_s14  ;;  %s3758_s14 = smul.u32 24, %s4205_s28 }
  0x2f   : > { %995 = vrot.lane.b32.xlu1 %v307_v0, %s3808_s15  ;;  %993 = vrot.lane.b32.xlu0 %v313_v3, %s3808_s15 }
  0x33   : > { %997 = vrot.lane.b32.xlu1 %v314_v4, %s3808_s15  ;;  %991 = vrot.lane.b32.xlu0 %v306_v1, %s3808_s15 }
  0x37   : > { %1166 = vrot.lane.b32.xlu1 %v307_v0, %s3809_s16  ;;  %1164 = vrot.lane.b32.xlu0 %v313_v3, %s3809_s16 }
  0x3b   : > { %1168 = vrot.lane.b32.xlu1 %v314_v4, %s3809_s16  ;;  %1162 = vrot.lane.b32.xlu0 %v306_v1, %s3809_s16 }
  0x3f   : > { %1337 = vrot.lane.b32.xlu1 %v307_v0, %s3810_s17  ;;  %1335 = vrot.lane.b32.xlu0 %v313_v3, %s3810_s17 }
  0x43   : > { %1339 = vrot.lane.b32.xlu1 %v314_v4, %s3810_s17  ;;  %1333 = vrot.lane.b32.xlu0 %v306_v1, %s3810_s17  ;;  %s305_s17 = scalar_lea.vmem %s4203_s8, %s3758_s14 }
  0x47   : > { %1508 = vrot.lane.b32.xlu1 %v307_v0, %s3811_s18  ;;  %1506 = vrot.lane.b32.xlu0 %v313_v3, %s3811_s18 }
  0x4b   : > { %1510 = vrot.lane.b32.xlu1 %v314_v4, %s3811_s18  ;;  %1504 = vrot.lane.b32.xlu0 %v306_v1, %s3811_s18 }
  0x4f   : > { %1679 = vrot.lane.b32.xlu1 %v307_v0, %s3813_s19  ;;  %1677 = vrot.lane.b32.xlu0 %v313_v3, %s3813_s19 }
  0x53   : > { %1681 = vrot.lane.b32.xlu1 %v314_v4, %s3813_s19  ;;  %1675 = vrot.lane.b32.xlu0 %v306_v1, %s3813_s19 }
  0x57   : > { %1847 = vperm.xlu0 %3787, %v1844_v6  }
  0x81   : > { %v320_v7 = vpop.permute.xlu0 %319  ;;  %v316_v8 = vpop.permute.xlu1 %315 }
  0x85   : > { %v487_v9 = vpop.permute.xlu1 %486  ;;  %v318_v10 = vpop.permute.xlu0 %317 }
  0x86   : > { %v325_v11 = vsel %vm323_vm0, %v318_v10, %v320_v7  ;;  %v324_v12 = vsel %vm323_vm0, %v316_v8, %v318_v10 }
  0x87   : > { %3569 = vmatprep.subr.msk.mxu0 %vm331_vm1, %v325_v11 }
  0x88   : > { %3570 = vmatpush1.msk.msra.mxu0 %vm331_vm1, %v324_v12 }
  0x89   : > { %v322_v14 = vpop.permute.xlu1 %321  ;;  %v485_v15 = vpop.permute.xlu0 %484  ;;  %3571 = vmatmul.mubr.msk.f32.vlgmr.msra.gmra.mxu0 %vm327_vm3, %v3568_v13 }
  0x8a   : > { %v492_v16 = vsel %vm490_vm2, %v485_v15, %v487_v9  ;;  %3572 = vmatprep.subr.msk.mxu1 %vm331_vm1, %v322_v14  ;;  %v326_v17 = vsel %vm323_vm0, %v320_v7, %v322_v14  ;;  %569 = vmatprep.mubr.f32.mxu0 %v3803_v2  ;;  %vm1904_vm0 = vcmask 1031168  }
  0x8b   : > { %3573 = vmatpush1.msk.msra.mxu1 %vm331_vm1, %v326_v17  ;;  %3575 = vmatprep.subr.msk.mxu0 %vm331_vm1, %v492_v16 }
  0x8c   : > { %3574 = vmatmul.mubr.msk.f32.vlgmr.msra.gmra.mxu1 %vm327_vm3, %v3568_v13  ;;  %v3623_v13 = vld [vmem:[%s4198_s3 + $0x20] sm:$0xf] }
  0x8d   : > { %v489_v18 = vpop.permute.xlu1 %488  ;;  %v483_v19 = vpop.permute.xlu0 %482  ;;  %640 = vmatprep.mubr.f32.mxu1 %v3803_v2 }
  0x8e   : > { %v493_v21 = vsel %vm490_vm2, %v487_v9, %v489_v18  ;;  %v491_v22 = vsel %vm490_vm2, %v483_v19, %v485_v15  ;;  %3578 = vmatprep.subr.msk.mxu1 %vm331_vm1, %v489_v18  ;;  %vm2215_vm2 = vcmask 1014784  }
  0x8f   : > { %3579 = vmatpush1.msk.msra.mxu1 %vm331_vm1, %v493_v21  ;;  %3576 = vmatpush1.msk.msra.mxu0 %vm331_vm1, %v491_v22 }
  0x90   : > { %3580 = vmatmul.mubr.msk.f32.vlgmr.msra.gmra.mxu1 %vm327_vm3, %v308_v20  ;;  %3577 = vmatmul.mubr.msk.f32.vlgmr.msra.gmra.mxu0 %vm327_vm3, %v308_v20 }
  0x91   : > { %v654_v23 = vpop.permute.xlu1 %653  ;;  %v652_v24 = vpop.permute.xlu0 %651  ;;  %807 = vmatprep.mubr.f32.mxu1 %v3803_v2  ;;  %736 = vmatprep.mubr.f32.mxu0 %v3803_v2 }
  0x92   : > { %v659_v25 = vsel %vm657_vm4, %v652_v24, %v654_v23 }
  0x93   : > { %3582 = vmatprep.subr.msk.mxu0 %vm331_vm1, %v659_v25 }
  0x95   : > { %v656_v26 = vpop.permute.xlu1 %655  ;;  %v650_v27 = vpop.permute.xlu0 %649 }
  0x96   : > { %v660_v29 = vsel %vm657_vm4, %v654_v23, %v656_v26  ;;  %v658_v30 = vsel %vm657_vm4, %v650_v27, %v652_v24  ;;  %3585 = vmatprep.subr.msk.mxu1 %vm331_vm1, %v656_v26  ;;  %vm2379_vm4 = vcmask 719872  }
  0x97   : > { %3586 = vmatpush1.msk.msra.mxu1 %vm331_vm1, %v660_v29  ;;  %3583 = vmatpush1.msk.msra.mxu0 %vm331_vm1, %v658_v30 }
  0x98   : > { %3587 = vmatmul.mubr.msk.f32.vlgmr.msra.gmra.mxu1 %vm327_vm3, %v3581_v28  ;;  %3584 = vmatmul.mubr.msk.f32.vlgmr.msra.gmra.mxu0 %vm327_vm3, %v3581_v28 }
  0x99   : > { %v825_v31 = vpop.permute.xlu1 %824  ;;  %v823_v32 = vpop.permute.xlu0 %822  ;;  %978 = vmatprep.mubr.f32.mxu1 %v3803_v2  ;;  %907 = vmatprep.mubr.f32.mxu0 %v3803_v2 }
  0x9a   : > { %v830_v33 = vsel %vm828_vm5, %v823_v32, %v825_v31 }
  0x9b   : > { %3589 = vmatprep.subr.msk.mxu0 %vm331_vm1, %v830_v33 }
  0x9d   : > { %v827_v34 = vpop.permute.xlu1 %826  ;;  %v821_v35 = vpop.permute.xlu0 %820 }
  0x9e   : > { %v831_v37 = vsel %vm828_vm5, %v825_v31, %v827_v34  ;;  %v829_v38 = vsel %vm828_vm5, %v821_v35, %v823_v32  ;;  %3592 = vmatprep.subr.msk.mxu1 %vm331_vm1, %v827_v34  ;;  %vm2874_vm5 = vcmask 392192  }
  0x9f   : > { %3593 = vmatpush1.msk.msra.mxu1 %vm331_vm1, %v831_v37  ;;  %3590 = vmatpush1.msk.msra.mxu0 %vm331_vm1, %v829_v38 }
  0xa0   : > { %3594 = vmatmul.mubr.msk.f32.vlgmr.msra.gmra.mxu1 %vm327_vm3, %v3588_v36  ;;  %3591 = vmatmul.mubr.msk.f32.vlgmr.msra.gmra.mxu0 %vm327_vm3, %v3588_v36 }
  0xa1   : > { %v996_v39 = vpop.permute.xlu1 %995  ;;  %v994_v40 = vpop.permute.xlu0 %993  ;;  %1149 = vmatprep.mubr.f32.mxu1 %v3803_v2  ;;  %1078 = vmatprep.mubr.f32.mxu0 %v3803_v2 }
  0xa2   : > { %v1001_v41 = vsel %vm999_vm6, %v994_v40, %v996_v39 }
  0xa3   : > { %3596 = vmatprep.subr.msk.mxu0 %vm331_vm1, %v1001_v41 }
  0xa5   : > { %v998_v42 = vpop.permute.xlu1 %997  ;;  %v992_v43 = vpop.permute.xlu0 %991 }
  0xa6   : > { %v1002_v45 = vsel %vm999_vm6, %v996_v39, %v998_v42  ;;  %v1000_v46 = vsel %vm999_vm6, %v992_v43, %v994_v40  ;;  %3599 = vmatprep.subr.msk.mxu1 %vm331_vm1, %v998_v42  ;;  %vm2543_vm6 = vcmask 703488  }
  0xa7   : > { %3600 = vmatpush1.msk.msra.mxu1 %vm331_vm1, %v1002_v45  ;;  %3597 = vmatpush1.msk.msra.mxu0 %vm331_vm1, %v1000_v46 }
  0xa8   : > { %3601 = vmatmul.mubr.msk.f32.vlgmr.msra.gmra.mxu1 %vm327_vm3, %v3595_v44  ;;  %3598 = vmatmul.mubr.msk.f32.vlgmr.msra.gmra.mxu0 %vm327_vm3, %v3595_v44 }
  0xa9   : > { %v1167_v47 = vpop.permute.xlu1 %1166  ;;  %v1165_v48 = vpop.permute.xlu0 %1164  ;;  %1320 = vmatprep.mubr.f32.mxu1 %v3803_v2  ;;  %1249 = vmatprep.mubr.f32.mxu0 %v3803_v2 }
  0xaa   : > { %v1172_v49 = vsel %vm1170_vm7, %v1165_v48, %v1167_v47 }
  0xab   : > { %3603 = vmatprep.subr.msk.mxu0 %vm331_vm1, %v1172_v49 }
  0xad   : > { %v1169_v50 = vpop.permute.xlu1 %1168  ;;  %v1163_v51 = vpop.permute.xlu0 %1162 }
  0xae   : > { %v1173_v53 = vsel %vm1170_vm7, %v1167_v47, %v1169_v50  ;;  %v1171_v54 = vsel %vm1170_vm7, %v1163_v51, %v1165_v48  ;;  %3606 = vmatprep.subr.msk.mxu1 %vm331_vm1, %v1169_v50  ;;  %vm2707_vm7 = vcmask 687104  }
  0xaf   : > { %3607 = vmatpush1.msk.msra.mxu1 %vm331_vm1, %v1173_v53  ;;  %3604 = vmatpush1.msk.msra.mxu0 %vm331_vm1, %v1171_v54  ;;  %v1868_v54 = vlaneseq }
  0xb0   : > { %3608 = vmatmul.mubr.msk.f32.vlgmr.msra.gmra.mxu1 %vm327_vm3, %v3602_v52  ;;  %3605 = vmatmul.mubr.msk.f32.vlgmr.msra.gmra.mxu0 %vm327_vm3, %v3602_v52 }
  0xb1   : > { %v1338_v55 = vpop.permute.xlu1 %1337  ;;  %v1336_v56 = vpop.permute.xlu0 %1335  ;;  %1420 = vmatprep.mubr.f32.mxu0 %v3803_v2  ;;  %1491 = vmatprep.mubr.f32.mxu1 %v3803_v2 }
  0xb2   : > { %v1343_v57 = vsel %vm1341_vm8, %v1336_v56, %v1338_v55 }
  0xb3   : > { %3610 = vmatprep.subr.msk.mxu0 %vm331_vm1, %v1343_v57 }
  0xb5   : > { %v1340_v58 = vpop.permute.xlu1 %1339  ;;  %v1334_v59 = vpop.permute.xlu0 %1333 }
  0xb6   : > { %v1344_v61 = vsel %vm1341_vm8, %v1338_v55, %v1340_v58  ;;  %v1342_v62 = vsel %vm1341_vm8, %v1334_v59, %v1336_v56  ;;  %3613 = vmatprep.subr.msk.mxu1 %vm331_vm1, %v1340_v58  ;;  %vm3041_vm8 = vcmask 375808  }
  0xb7   : > { %3611 = vmatpush1.msk.msra.mxu0 %vm331_vm1, %v1342_v62  ;;  %3614 = vmatpush1.msk.msra.mxu1 %vm331_vm1, %v1344_v61  ;;  %v3994_v61 = vshrl.u32 %v1868_v54, 7 }
  0xb8   : > { %3612 = vmatmul.mubr.msk.f32.vlgmr.msra.gmra.mxu0 %vm327_vm3, %v3609_v60  ;;  %3615 = vmatmul.mubr.msk.f32.vlgmr.msra.gmra.mxu1 %vm327_vm3, %v3609_v60 }
  0xb9   : > { %v1509_v63 = vpop.permute.xlu1 %1508  ;;  %v1507_v0 = vpop.permute.xlu0 %1506  ;;  %1591 = vmatprep.mubr.f32.mxu0 %v3803_v2  ;;  %1662 = vmatprep.mubr.f32.mxu1 %v3803_v2 }
  0xba   : > { %v1514_v1 = vsel %vm1512_vm9, %v1507_v0, %v1509_v63 }
  0xbb   : > { %3617 = vmatprep.subr.msk.mxu0 %vm331_vm1, %v1514_v1 }
  0xbd   : > { %v1511_v3 = vpop.permute.xlu1 %1510  ;;  %v1505_v4 = vpop.permute.xlu0 %1504 }
  0xbe   : > { %v1515_v6 = vsel %vm1512_vm9, %v1509_v63, %v1511_v3  ;;  %v1513_v7 = vsel %vm1512_vm9, %v1505_v4, %v1507_v0  ;;  %3620 = vmatprep.subr.msk.mxu1 %vm331_vm1, %v1511_v3  ;;  %vm3208_vm9 = vcmask 359424  }
  0xbf   : > { %3618 = vmatpush1.msk.msra.mxu0 %vm331_vm1, %v1513_v7  ;;  %3621 = vmatpush1.msk.msra.mxu1 %vm331_vm1, %v1515_v6 }
  0xc0   : > { %3619 = vmatmul.mubr.msk.f32.vlgmr.msra.gmra.mxu0 %vm327_vm3, %v3616_v5  ;;  %3622 = vmatmul.mubr.msk.f32.vlgmr.msra.gmra.mxu1 %vm327_vm3, %v3616_v5 }
  0xc1   : > { %v1680_v8 = vpop.permute.xlu1 %1679  ;;  %v1678_v9 = vpop.permute.xlu0 %1677  ;;  %1762 = vmatprep.mubr.f32.mxu0 %v3803_v2  ;;  %1833 = vmatprep.mubr.f32.mxu1 %v3803_v2 }
  0xc2   : > { %v1685_v10 = vsel %vm1683_vm10, %v1678_v9, %v1680_v8 }
  0xc3   : > { %3624 = vmatprep.subr.msk.mxu0 %vm331_vm1, %v1685_v10 }
  0xc5   : > { %v1682_v11 = vpop.permute.xlu1 %1681  ;;  %v1676_v12 = vpop.permute.xlu0 %1675 }
  0xc6   : > { %v1686_v14 = vsel %vm1683_vm10, %v1680_v8, %v1682_v11  ;;  %v1684_v15 = vsel %vm1683_vm10, %v1676_v12, %v1678_v9  ;;  %3627 = vmatprep.subr.msk.mxu1 %vm331_vm1, %v1682_v11  ;;  %v1878_v9 = vsub.s32 2, %v3994_v61 }
  0xc7   : > { %3625 = vmatpush1.msk.msra.mxu0 %vm331_vm1, %v1684_v15  ;;  %3628 = vmatpush1.msk.msra.mxu1 %vm331_vm1, %v1686_v14 }
  0xc8   : > { %3626 = vmatmul.mubr.msk.f32.vlgmr.msra.gmra.mxu0 %vm327_vm3, %v3623_v13  ;;  %3629 = vmatmul.mubr.msk.f32.vlgmr.msra.gmra.mxu1 %vm327_vm3, %v3623_v13  ;;  %v1866_v13 = vld [vmem:[%s4196_s1] sm:$0xf] }
  0xc9   : > { %3708 = vmatprep.subr.mxu1 %v3803_v2  ;;  %1980 = vmatprep.mubr.f32.mxu0 %v3803_v2  ;;  %v1879_v15 = vrot.slane %v1866_v13, %v1878_v9 }
  0xca   : > { %3710 = vmatprep.mubr.msk.f32.mxu1 %vm3814_vm11, %v3803_v2 }
  0xd2   : > { %v1848_v4 = vpop.permute.xlu0 %1847 }
 0x149   : > { %v406_v16 = vpop.f32.mrf.mxu0 }
 0x14b   : > { %v408_v18 = vpop.f32.mrf.mxu0 }
 0x14c   : > { %v477_v17 = vpop.f32.mrf.mxu1 }
 0x14e   : > { %v479_v19 = vpop.f32.mrf.mxu1 }
 0x150   : > { %v571_v20 = vpop.f32.mrf.mxu0  ;;  %v642_v21 = vpop.f32.mrf.mxu1 }
 0x151   : > { %v572_v35 = vadd.f32 %v571_v20, %v406_v16  ;;  %v643_v37 = vadd.f32 %v642_v21, %v477_v17 }
 0x152   : > { %v573_v22 = vpop.f32.mrf.mxu0  ;;  %v644_v23 = vpop.f32.mrf.mxu1 }
 0x153   : > { %v574_v43 = vadd.f32 %v573_v22, %v408_v18  ;;  %v645_v10 = vadd.f32 %v644_v23, %v479_v19  ;;  %v1870_v19 = vsub.s32 0, %v3994_v61 }
 0x158   : > { %v738_v24 = vpop.f32.mrf.mxu0  ;;  %v809_v25 = vpop.f32.mrf.mxu1 }
 0x159   : > { %v814_v39 = vadd.f32 %v738_v24, %v572_v35  ;;  %v816_v41 = vadd.f32 %v809_v25, %v643_v37 }
 0x15a   : > { %v740_v26 = vpop.f32.mrf.mxu0  ;;  %v811_v27 = vpop.f32.mrf.mxu1 }
 0x15b   : > { %v815_v49 = vadd.f32 %v740_v26, %v574_v43  ;;  %v817_v16 = vadd.f32 %v811_v27, %v645_v10  ;;  %v1871_v27 = vrot.slane %v1866_v13, %v1870_v19 }
 0x160   : > { %v909_v28 = vpop.f32.mrf.mxu0  ;;  %v980_v29 = vpop.f32.mrf.mxu1 }
 0x161   : > { %v985_v44 = vadd.f32 %v909_v28, %v814_v39  ;;  %v987_v46 = vadd.f32 %v980_v29, %v816_v41 }
 0x162   : > { %v911_v30 = vpop.f32.mrf.mxu0  ;;  %v982_v31 = vpop.f32.mrf.mxu1 }
 0x163   : > { %v986_v55 = vadd.f32 %v911_v30, %v815_v49  ;;  %v988_v25 = vadd.f32 %v982_v31, %v817_v16  ;;  %v3365_v49 = vld [vmem:[%s4201_s6] sm:$0xff] }
 0x168   : > { %v1080_v32 = vpop.f32.mrf.mxu0  ;;  %v1151_v33 = vpop.f32.mrf.mxu1 }
 0x169   : > { %v1156_v50 = vadd.f32 %v1080_v32, %v985_v44  ;;  %v1158_v51 = vadd.f32 %v1151_v33, %v987_v46  ;;  %v1874_v33 = vsub.s32 1, %v3994_v61  ;;  %v1882_v44 = vsub.s32 3, %v3994_v61  ;;  %v3410_v61 = vld [vmem:[%s4202_s7] sm:$0xff] }
 0x16a   : > { %v1082_v34 = vpop.f32.mrf.mxu0  ;;  %v3992_v36 = vpop.f32.mrf.mxu1 }
 0x16b   : > { %v1157_v62 = vadd.f32 %v1082_v34, %v986_v55  ;;  %v1159_v29 = vadd.f32 %v3992_v36, %v988_v25  ;;  %v1875_v39 = vrot.slane %v1866_v13, %v1874_v33  ;;  %v1883_v46 = vrot.slane %v1866_v13, %v1882_v44 }
 0x170   : > { %v1251_v38 = vpop.f32.mrf.mxu0  ;;  %v1322_v40 = vpop.f32.mrf.mxu1 }
 0x171   : > { %v1327_v56 = vadd.f32 %v1251_v38, %v1156_v50  ;;  %v1329_v59 = vadd.f32 %v1322_v40, %v1158_v51  ;;  %v3630_v50 = vld [vmem:[%s4200_s5 + $0x8] sm:$0xff] }
 0x172   : > { %v1253_v42 = vpop.f32.mrf.mxu0  ;;  %v1324_v45 = vpop.f32.mrf.mxu1 }
 0x173   : > { %v1328_v11 = vadd.f32 %v1253_v42, %v1157_v62  ;;  %v1330_v31 = vadd.f32 %v1324_v45, %v1159_v29 }
 0x178   : > { %v1422_v47 = vpop.f32.mrf.mxu0  ;;  %v1493_v48 = vpop.f32.mrf.mxu1 }
 0x179   : > { %v1500_v60 = vadd.f32 %v1493_v48, %v1329_v59  ;;  %v1498_v63 = vadd.f32 %v1422_v47, %v1327_v56  ;;  %v3641_v56 = vld [vmem:[%s4200_s5 + $0x10] sm:$0xff]  ;;  %v3647_v59 = vld [vmem:[%s4200_s5 + $0x18] sm:$0xff] }
 0x17a   : > { %v1424_v52 = vpop.f32.mrf.mxu0  ;;  %v1495_v53 = vpop.f32.mrf.mxu1 }
 0x17b   : > { %v1499_v17 = vadd.f32 %v1424_v52, %v1328_v11  ;;  %v1501_v35 = vadd.f32 %v1495_v53, %v1330_v31  ;;  %v1892_v53 = vld [vmem:[%s4200_s5] sm:$0xff] }
 0x180   : > { %v1593_v57 = vpop.f32.mrf.mxu0  ;;  %v1664_v58 = vpop.f32.mrf.mxu1 }
 0x181   : > { %v1671_v3 = vadd.f32 %v1664_v58, %v1500_v60  ;;  %v1669_v5 = vadd.f32 %v1593_v57, %v1498_v63  ;;  %v3653_v63 = vld [vmem:[%s4200_s5 + $0x20] sm:$0xff] }
 0x182   : > { %v1595_v0 = vpop.f32.mrf.mxu0  ;;  %v1666_v1 = vpop.f32.mrf.mxu1 }
 0x183   : > { %v1670_v22 = vadd.f32 %v1595_v0, %v1499_v17  ;;  %v1672_v36 = vadd.f32 %v1666_v1, %v1501_v35  ;;  %v3665_v17 = vld [vmem:[%s4200_s5 + $0x30] sm:$0xff] }
 0x188   : > { %v1764_v6 = vpop.f32.mrf.mxu0  ;;  %v1835_v7 = vpop.f32.mrf.mxu1 }
 0x189   : > { %v1842_v8 = vadd.f32 %v1835_v7, %v1671_v3  ;;  %v1840_v12 = vadd.f32 %v1764_v6, %v1669_v5  ;;  %v3659_v7 = vld [vmem:[%s4200_s5 + $0x28] sm:$0xff] }
 0x18a   : > { %v1766_v21 = vpop.f32.mrf.mxu0  ;;  %v1837_v38 = vpop.f32.mrf.mxu1 }
 0x18b   : > { %v1852_v14 = vadd.f32 %v1848_v4, %v1842_v8  ;;  %v1850_v18 = vadd.f32 %v1848_v4, %v1840_v12  ;;  %v1841_v26 = vadd.f32 %v1766_v21, %v1670_v22  ;;  %v1843_v40 = vadd.f32 %v1837_v38, %v1672_v36 }
 0x18d   : > { %vm1856_vm12 = vcmp.gt.f32.partialorder %v1852_v14, 0.0  ;;  %v1860_v20 = vmul.f32 0.01, %v1852_v14  ;;  %v1858_v28 = vmul.f32 0.01, %v1850_v18  ;;  %vm1854_vm13 = vcmp.gt.f32.partialorder %v1850_v18, 0.0 }
 0x18e   : > { %v1851_v30 = vadd.f32 %v1848_v4, %v1841_v26  ;;  %v1853_v43 = vadd.f32 %v1848_v4, %v1843_v40 }
 0x18f   : > { %v1864_v24 = vsel %vm1856_vm12, %v1852_v14, %v1860_v20  ;;  %v1862_v32 = vsel %vm1854_vm13, %v1850_v18, %v1858_v28  ;;  %vm3411_vm12 = vcmask 64512  }
 0x190   : > { %v4005_v23 = vmul.f32 %v1879_v15, %v1864_v24  ;;  %v4018_v34 = vmul.f32 %v1871_v27, %v1862_v32  ;;  %v1859_v37 = vmul.f32 0.01, %v1851_v30  ;;  %vm1855_vm14 = vcmp.gt.f32.partialorder %v1851_v30, 0.0 }
 0x191   : > { %v1861_v45 = vmul.f32 0.01, %v1853_v43  ;;  %vm1857_vm15 = vcmp.gt.f32.partialorder %v1853_v43, 0.0 }
 0x192   : > { %2213 = vrot.lane.b32.xlu0 %v4005_v23, %s3815_s22  ;;  %1902 = vrot.lane.b32.xlu1 %v4005_v23, %s3816_s23  ;;  %v1863_v41 = vsel %vm1855_vm14, %v1851_v30, %v1859_v37  ;;  %v3671_v30 = vld [vmem:[%s4200_s5 + $0x38] sm:$0xff] }
 0x193   : > { %v4029_v42 = vmul.f32 %v1875_v39, %v1863_v41  ;;  %v1865_v47 = vsel %vm1857_vm15, %v1853_v43, %v1861_v45  ;;  %v3677_v41 = vld [vmem:[%s4200_s5 + $0x40] sm:$0xff] }
 0x194   : > { %v1891_v48 = vmul.f32 %v1883_v46, %v1865_v47 }
 0x196   : > { %2541 = vrot.lane.b32.xlu0 %v4005_v23, %s3817_s24  ;;  %2377 = vrot.lane.b32.xlu1 %v4005_v23, %s3818_s25 }
 0x19a   : > { %2209 = vrot.lane.b32.xlu1 %v4018_v34, %s3815_s22  ;;  %1898 = vrot.lane.b32.xlu0 %v4018_v34, %s3816_s23 }
 0x19e   : > { %2537 = vrot.lane.b32.xlu1 %v4018_v34, %s3817_s24  ;;  %2373 = vrot.lane.b32.xlu0 %v4018_v34, %s3818_s25 }
 0x1a2   : > { %1900 = vrot.lane.b32.xlu1 %v4029_v42, %s3816_s23  ;;  %2701 = vrot.lane.b32.xlu0 %v4018_v34, %s3819_s26 }
 0x1a6   : > { %2705 = vrot.lane.b32.xlu1 %v4005_v23, %s3819_s26  ;;  %2870 = vrot.lane.b32.xlu0 %v4005_v23, %s3820_s29 }
 0x1aa   : > { %2211 = vrot.lane.b32.xlu1 %v4029_v42, %s3815_s22  ;;  %2375 = vrot.lane.b32.xlu0 %v4029_v42, %s3818_s25 }
 0x1ae   : > { %2866 = vrot.lane.b32.xlu1 %v4018_v34, %s3820_s29  ;;  %2872 = vrot.lane.b32.xlu0 %v1891_v48, %s3820_s29 }
 0x1b2   : > { %2539 = vrot.lane.b32.xlu1 %v4029_v42, %s3817_s24  ;;  %2703 = vrot.lane.b32.xlu0 %v4029_v42, %s3819_s26 }
 0x1b6   : > { %3033 = vrot.lane.b32.xlu1 %v4018_v34, %s3821_s30  ;;  %3037 = vrot.lane.b32.xlu0 %v4005_v23, %s3821_s30 }
 0x1ba   : > { %2868 = vrot.lane.b32.xlu1 %v4029_v42, %s3820_s29  ;;  %3039 = vrot.lane.b32.xlu0 %v1891_v48, %s3821_s30 }
 0x1be   : > { %3035 = vrot.lane.b32.xlu1 %v4029_v42, %s3821_s30  ;;  %3204 = vrot.lane.b32.xlu0 %v4005_v23, %s3822_s9 }
 0x1c2   : > { %3202 = vrot.lane.b32.xlu1 %v4029_v42, %s3822_s9  ;;  %3206 = vrot.lane.b32.xlu0 %v1891_v48, %s3822_s9 }
 0x1c6   : > { %3200 = vrot.lane.b32.xlu1 %v4018_v34, %s3822_s9 }
 0x1ca   : > { %3368 = vperm.xlu1 %3788, %v3365_v49  }
 0x204   : > { %v2214_v51 = vpop.permute.xlu0 %2213  ;;  %v1903_v52 = vpop.permute.xlu1 %1902 }
 0x205   : > { %3709 = vmatpush3.msk.msra.mxu1 %vm331_vm1, %v1903_v52 }
 0x206   : > { %3711 = vmatmul.mubr.msk.f32.vlgmr.msra.gmra.mxu1 %vm327_vm3, %v3630_v50  ;;  %3713 = vmatprep.subr.mxu1 %v3803_v2 }
 0x207   : > { %3714 = vmatpush3.msk.msra.mxu1 %vm331_vm1, %v4005_v23  ;;  %3715 = vmatprep.mubr.msk.f32.mxu1 %vm3814_vm11, %v3803_v2 }
 0x208   : > { %v4067_v54 = vpop.permute.xlu0 %2541  ;;  %v2378_v55 = vpop.permute.xlu1 %2377  ;;  %3718 = vmatprep.subr.mxu1 %v3803_v2 }
 0x20a   : > { %3716 = vmatmul.mubr.msk.f32.vlgmr.msra.gmra.mxu1 %vm327_vm3, %v1892_v53 }
 0x20b   : > { %3719 = vmatpush3.msk.msra.mxu1 %vm331_vm1, %v2214_v51  ;;  %3720 = vmatprep.mubr.msk.f32.mxu1 %vm3814_vm11, %v3803_v2 }
 0x20c   : > { %v2210_v57 = vpop.permute.xlu1 %2209  ;;  %v1899_v58 = vpop.permute.xlu0 %1898  ;;  %3723 = vmatprep.subr.mxu1 %v3803_v2 }
 0x20e   : > { %3721 = vmatmul.mubr.msk.f32.vlgmr.msra.gmra.mxu1 %vm327_vm3, %v3641_v56 }
 0x20f   : > { %3724 = vmatpush3.msk.msra.mxu1 %vm331_vm1, %v2378_v55  ;;  %3725 = vmatprep.mubr.msk.f32.mxu1 %vm3814_vm11, %v3803_v2 }
 0x210   : > { %v2538_v60 = vpop.permute.xlu1 %2537  ;;  %v2374_v62 = vpop.permute.xlu0 %2373  ;;  %3728 = vmatprep.subr.mxu1 %v3803_v2 }
 0x212   : > { %3726 = vmatmul.mubr.msk.f32.vlgmr.msra.gmra.mxu1 %vm327_vm3, %v3647_v59 }
 0x213   : > { %3729 = vmatpush3.msk.msra.mxu1 %vm331_vm1, %v4067_v54  ;;  %3730 = vmatprep.mubr.msk.f32.mxu1 %vm3814_vm11, %v3803_v2 }
 0x214   : > { %v1901_v0 = vpop.permute.xlu1 %1900  ;;  %v2702_v1 = vpop.permute.xlu0 %2701  ;;  %3733 = vmatprep.subr.mxu1 %v3803_v2 }
 0x215   : > { %v1905_v3 = vsel %vm1904_vm0, %v1899_v58, %v1901_v0  ;;  %v1906_v4 = vsel %vm1904_vm0, %v1901_v0, %v1903_v52 }
 0x216   : > { %3631 = vmatprep.subr.msk.mxu0 %vm331_vm1, %v1906_v4  ;;  %3731 = vmatmul.mubr.msk.f32.vlgmr.msra.gmra.mxu1 %vm327_vm3, %v3653_v63 }
 0x217   : > { %3632 = vmatpush1.msk.msra.mxu0 %vm331_vm1, %v1905_v3  ;;  %3735 = vmatprep.mubr.msk.f32.mxu1 %vm3814_vm11, %v3803_v2 }
 0x218   : > { %v2706_v5 = vpop.permute.xlu1 %2705  ;;  %3633 = vmatmul.mubr.msk.f32.vlgmr.msra.gmra.mxu0 %vm327_vm3, %v3630_v50  ;;  %3636 = vmatprep.subr.msk.mxu0 %vm331_vm1, %v4029_v42  ;;  %v2871_v6 = vpop.permute.xlu0 %2870 }
 0x219   : > { %3637 = vmatpush1.msk.msra.mxu0 %vm331_vm1, %v4018_v34  ;;  %3734 = vmatpush3.msk.msra.mxu1 %vm331_vm1, %v2706_v5 }
 0x21a   : > { %2130 = vmatprep.mubr.f32.mxu0 %v3803_v2  ;;  %3738 = vmatprep.subr.mxu1 %v3803_v2 }
 0x21b   : > { %3736 = vmatmul.mubr.msk.f32.vlgmr.msra.gmra.mxu1 %vm327_vm3, %v3659_v7 }
 0x21c   : > { %v2212_v8 = vpop.permute.xlu1 %2211  ;;  %3638 = vmatmul.mubr.msk.f32.vlgmr.msra.gmra.mxu0 %vm327_vm3, %v1892_v53  ;;  %v2376_v10 = vpop.permute.xlu0 %2375  ;;  %3740 = vmatprep.mubr.msk.f32.mxu1 %vm3814_vm11, %v3803_v2 }
 0x21d   : > { %v2216_v11 = vsel %vm2215_vm2, %v2210_v57, %v2212_v8  ;;  %v2217_v12 = vsel %vm2215_vm2, %v2212_v8, %v2214_v51  ;;  %2291 = vmatprep.mubr.f32.mxu0 %v3803_v2  ;;  %v2381_v13 = vsel %vm2379_vm4, %v2376_v10, %v2378_v55  ;;  %v2380_v14 = vsel %vm2379_vm4, %v2374_v62, %v2376_v10 }
 0x21e   : > { %3642 = vmatprep.subr.msk.mxu0 %vm331_vm1, %v2217_v12 }
 0x21f   : > { %3643 = vmatpush1.msk.msra.mxu0 %vm331_vm1, %v2216_v11 }
 0x220   : > { %v2867_v15 = vpop.permute.xlu1 %2866  ;;  %3644 = vmatmul.mubr.msk.f32.vlgmr.msra.gmra.mxu0 %vm327_vm3, %v3641_v56  ;;  %3648 = vmatprep.subr.msk.mxu0 %vm331_vm1, %v2381_v13  ;;  %v2873_v16 = vpop.permute.xlu0 %2872 }
 0x221   : > { %v2877_v18 = vsel %vm2874_vm5, %v2871_v6, %v2873_v16  ;;  %3649 = vmatpush1.msk.msra.mxu0 %vm331_vm1, %v2380_v14  ;;  %2455 = vmatprep.mubr.f32.mxu0 %v3803_v2 }
 0x222   : > { %3739 = vmatpush3.msk.msra.mxu1 %vm331_vm1, %v2877_v18 }
 0x223   : > { %3741 = vmatmul.mubr.msk.f32.vlgmr.msra.gmra.mxu1 %vm327_vm3, %v3665_v17  ;;  %3743 = vmatprep.subr.mxu1 %v3803_v2 }
 0x224   : > { %v2540_v20 = vpop.permute.xlu1 %2539  ;;  %3650 = vmatmul.mubr.msk.f32.vlgmr.msra.gmra.mxu0 %vm327_vm3, %v3647_v59  ;;  %v2704_v21 = vpop.permute.xlu0 %2703  ;;  %3745 = vmatprep.mubr.msk.f32.mxu1 %vm3814_vm11, %v3803_v2 }
 0x225   : > { %v2544_v22 = vsel %vm2543_vm6, %v2538_v60, %v2540_v20  ;;  %v2545_v24 = vsel %vm2543_vm6, %v2540_v20, %v4067_v54  ;;  %2619 = vmatprep.mubr.f32.mxu0 %v3803_v2  ;;  %v2709_v23 = vsel %vm2707_vm7, %v2704_v21, %v2706_v5  ;;  %v2708_v25 = vsel %vm2707_vm7, %v2702_v1, %v2704_v21 }
 0x226   : > { %3654 = vmatprep.subr.msk.mxu0 %vm331_vm1, %v2545_v24 }
 0x227   : > { %3655 = vmatpush1.msk.msra.mxu0 %vm331_vm1, %v2544_v22 }
 0x228   : > { %v3034_v26 = vpop.permute.xlu1 %3033  ;;  %3656 = vmatmul.mubr.msk.f32.vlgmr.msra.gmra.mxu0 %vm327_vm3, %v3653_v63  ;;  %3660 = vmatprep.subr.msk.mxu0 %vm331_vm1, %v2709_v23  ;;  %v3038_v28 = vpop.permute.xlu0 %3037 }
 0x229   : > { %3661 = vmatpush1.msk.msra.mxu0 %vm331_vm1, %v2708_v25  ;;  %2783 = vmatprep.mubr.f32.mxu0 %v3803_v2 }
 0x22c   : > { %v2869_v27 = vpop.permute.xlu1 %2868  ;;  %3662 = vmatmul.mubr.msk.f32.vlgmr.msra.gmra.mxu0 %vm327_vm3, %v3659_v7  ;;  %v3040_v29 = vpop.permute.xlu0 %3039 }
 0x22d   : > { %v2875_v32 = vsel %vm2874_vm5, %v2867_v15, %v2869_v27  ;;  %v2876_v31 = vsel %vm2874_vm5, %v2869_v27, %v2871_v6  ;;  %v3044_v34 = vsel %vm3041_vm8, %v3038_v28, %v3040_v29  ;;  %2951 = vmatprep.mubr.f32.mxu0 %v3803_v2 }
 0x22e   : > { %3666 = vmatprep.subr.msk.mxu0 %vm331_vm1, %v2876_v31  ;;  %3744 = vmatpush3.msk.msra.mxu1 %vm331_vm1, %v3044_v34 }
 0x22f   : > { %3667 = vmatpush1.msk.msra.mxu0 %vm331_vm1, %v2875_v32  ;;  %3746 = vmatmul.mubr.msk.f32.vlgmr.msra.gmra.mxu1 %vm327_vm3, %v3671_v30 }
 0x230   : > { %v3036_v35 = vpop.permute.xlu1 %3035  ;;  %3668 = vmatmul.mubr.msk.f32.vlgmr.msra.gmra.mxu0 %vm327_vm3, %v3665_v17  ;;  %v3205_v37 = vpop.permute.xlu0 %3204  ;;  %3748 = vmatprep.subr.mxu1 %v3803_v2 }
 0x231   : > { %v3042_v38 = vsel %vm3041_vm8, %v3034_v26, %v3036_v35  ;;  %v3043_v36 = vsel %vm3041_vm8, %v3036_v35, %v3038_v28  ;;  %3118 = vmatprep.mubr.f32.mxu0 %v3803_v2  ;;  %3750 = vmatprep.mubr.msk.f32.mxu1 %vm3814_vm11, %v3803_v2 }
 0x232   : > { %3672 = vmatprep.subr.msk.mxu0 %vm331_vm1, %v3043_v36 }
 0x233   : > { %3673 = vmatpush1.msk.msra.mxu0 %vm331_vm1, %v3042_v38 }
 0x234   : > { %v3203_v39 = vpop.permute.xlu1 %3202  ;;  %3674 = vmatmul.mubr.msk.f32.vlgmr.msra.gmra.mxu0 %vm327_vm3, %v3671_v30  ;;  %v3207_v40 = vpop.permute.xlu0 %3206 }
 0x235   : > { %v3210_v42 = vsel %vm3208_vm9, %v3203_v39, %v3205_v37  ;;  %v3211_v43 = vsel %vm3208_vm9, %v3205_v37, %v3207_v40  ;;  %3285 = vmatprep.mubr.f32.mxu0 %v3803_v2 }
 0x236   : > { %3678 = vmatprep.subr.msk.mxu0 %vm331_vm1, %v3210_v42  ;;  %3749 = vmatpush3.msk.msra.mxu1 %vm331_vm1, %v3211_v43 }
 0x237   : > { %3751 = vmatmul.mubr.msk.f32.vlgmr.msra.gmra.mxu1 %vm327_vm3, %v3677_v41 }
 0x238   : > { %v3201_v44 = vpop.permute.xlu1 %3200 }
 0x239   : > { %v3209_v45 = vsel %vm3208_vm9, %v3201_v44, %v3203_v39 }
 0x23a   : > { %3679 = vmatpush1.msk.msra.mxu0 %vm331_vm1, %v3209_v45 }
 0x23b   : > { %3680 = vmatmul.mubr.msk.f32.vlgmr.msra.gmra.mxu0 %vm327_vm3, %v3677_v41  ;;  %3753 = vmatprep.subr.mxu0 %v3803_v2 }
 0x23c   : > { %3755 = vmatprep.mubr.msk.f32.mxu0 %vm3814_vm11, %v3803_v2  ;;  %vm3404_vm11 = vcmask 490496  }
 0x245   : > { %v3369_v34 = vpop.permute.xlu1 %3368 }
 0x2c6   : > { %v2053_v46 = vpop.f32.mrf.mxu1 }
 0x2c8   : > { %v3712_v47 = vpop.f32.mrf.mxu1 }
 0x2ca   : > { %v2203_v48 = vpop.f32.mrf.mxu1 }
 0x2cb   : > { %v2204_v63 = vadd.f32 %v2203_v48, %v2053_v46  ;;  %v3383_v48 = vld [vmem:[%s4197_s2] sm:$0x7] }
 0x2cc   : > { %v3717_v49 = vpop.f32.mrf.mxu1 }
 0x2ce   : > { %v2364_v50 = vpop.f32.mrf.mxu1 }
 0x2cf   : > { %v2370_v3 = vadd.f32 %v2364_v50, %v2204_v63 }
 0x2d0   : > { %v3722_v51 = vpop.f32.mrf.mxu1 }
 0x2d2   : > { %v2528_v52 = vpop.f32.mrf.mxu1 }
 0x2d3   : > { %v2534_v7 = vadd.f32 %v2528_v52, %v2370_v3 }
 0x2d4   : > { %v3727_v53 = vpop.f32.mrf.mxu1 }
 0x2d5   : > { %v3396_v53 = vrot.slane %v3383_v48, %v1878_v9 }
 0x2d6   : > { %v2692_v54 = vpop.f32.mrf.mxu1 }
 0x2d7   : > { %v2698_v11 = vadd.f32 %v2692_v54, %v2534_v7 }
 0x2d8   : > { %v1982_v55 = vpop.f32.mrf.mxu0  ;;  %v3732_v56 = vpop.f32.mrf.mxu1 }
 0x2d9   : > { %v3392_v56 = vrot.slane %v3383_v48, %v1874_v33 }
 0x2da   : > { %v1984_v57 = vpop.f32.mrf.mxu0 }
 0x2db   : > { %v2856_v58 = vpop.f32.mrf.mxu1 }
 0x2dc   : > { %v2132_v59 = vpop.f32.mrf.mxu0  ;;  %v2862_v18 = vadd.f32 %v2856_v58, %v2698_v11 }
 0x2dd   : > { %v3737_v60 = vpop.f32.mrf.mxu1  ;;  %v2133_v13 = vadd.f32 %v2132_v59, %v1982_v55  ;;  %v3388_v55 = vrot.slane %v3383_v48, %v1870_v19 }
 0x2de   : > { %v2134_v62 = vpop.f32.mrf.mxu0 }
 0x2df   : > { %v2135_v16 = vadd.f32 %v2134_v62, %v1984_v57 }
 0x2e0   : > { %v2293_v0 = vpop.f32.mrf.mxu0 }
 0x2e1   : > { %v2368_v17 = vadd.f32 %v2293_v0, %v2133_v13 }
 0x2e2   : > { %v2295_v1 = vpop.f32.mrf.mxu0 }
 0x2e3   : > { %v3024_v2 = vpop.f32.mrf.mxu1  ;;  %v2369_v22 = vadd.f32 %v2295_v1, %v2135_v16 }
 0x2e4   : > { %v2457_v4 = vpop.f32.mrf.mxu0  ;;  %v3030_v28 = vadd.f32 %v3024_v2, %v2862_v18 }
 0x2e5   : > { %v3742_v5 = vpop.f32.mrf.mxu1  ;;  %v2532_v24 = vadd.f32 %v2457_v4, %v2368_v17 }
 0x2e6   : > { %v2459_v6 = vpop.f32.mrf.mxu0 }
 0x2e7   : > { %v2533_v25 = vadd.f32 %v2459_v6, %v2369_v22 }
 0x2e8   : > { %v2621_v8 = vpop.f32.mrf.mxu0 }
 0x2e9   : > { %v2696_v26 = vadd.f32 %v2621_v8, %v2532_v24 }
 0x2ea   : > { %v2623_v10 = vpop.f32.mrf.mxu0 }
 0x2eb   : > { %v2697_v29 = vadd.f32 %v2623_v10, %v2533_v25 }
 0x2ec   : > { %v2785_v12 = vpop.f32.mrf.mxu0 }
 0x2ed   : > { %v2860_v30 = vadd.f32 %v2785_v12, %v2696_v26 }
 0x2ee   : > { %v2787_v14 = vpop.f32.mrf.mxu0 }
 0x2ef   : > { %v3191_v15 = vpop.f32.mrf.mxu1  ;;  %v2861_v35 = vadd.f32 %v2787_v14, %v2697_v29 }
 0x2f0   : > { %v2953_v20 = vpop.f32.mrf.mxu0  ;;  %v3197_v32 = vadd.f32 %v3191_v15, %v3030_v28 }
 0x2f1   : > { %v3747_v21 = vpop.f32.mrf.mxu1  ;;  %v3028_v37 = vadd.f32 %v2953_v20, %v2860_v30 }
 0x2f2   : > { %v2955_v23 = vpop.f32.mrf.mxu0 }
 0x2f3   : > { %v3029_v40 = vadd.f32 %v2955_v23, %v2861_v35 }
 0x2f4   : > { %v3120_v27 = vpop.f32.mrf.mxu0 }
 0x2f5   : > { %v3195_v41 = vadd.f32 %v3120_v27, %v3028_v37 }
 0x2f6   : > { %v3122_v36 = vpop.f32.mrf.mxu0 }
 0x2f7   : > { %v3358_v31 = vpop.f32.mrf.mxu1  ;;  %v3196_v44 = vadd.f32 %v3122_v36, %v3029_v40 }
 0x2f8   : > { %v3364_v38 = vadd.f32 %v3358_v31, %v3197_v32 }
 0x2f9   : > { %v3752_v39 = vpop.f32.mrf.mxu1 }
 0x2fa   : > { %v3373_v42 = vadd.f32 %v3369_v34, %v3364_v38 }
 0x2fb   : > { %v3287_v43 = vpop.f32.mrf.mxu0 }
 0x2fc   : > { %v3362_v45 = vadd.f32 %v3287_v43, %v3195_v41  ;;  %v3379_v46 = vmul.f32 0.01, %v3373_v42  ;;  %vm3376_vm1 = vcmp.gt.f32.partialorder %v3373_v42, 0.0 }
 0x2fd   : > { %v3289_v47 = vpop.f32.mrf.mxu0 }
 0x2fe   : > { %v3371_v49 = vadd.f32 %v3369_v34, %v3362_v45  ;;  %v3363_v50 = vadd.f32 %v3289_v47, %v3196_v44  ;;  %v3382_v54 = vsel %vm3376_vm1, %v3373_v42, %v3379_v46 }
 0x2ff   : > { %v3402_v60 = vmul.f32 %v3396_v53, %v3382_v54 }
 0x300   : > { %vm3374_vm3 = vcmp.gt.f32.partialorder %v3371_v49, 0.0  ;;  %v3377_v51 = vmul.f32 0.01, %v3371_v49  ;;  %v3372_v52 = vadd.f32 %v3369_v34, %v3363_v50 }
 0x301   : > { %v3405_v1 = vsel %vm3404_vm11, %v3402_v60, 0.0 }
 0x302   : > { %vm3375_vm10 = vcmp.gt.f32.partialorder %v3372_v52, 0.0  ;;  %v3378_v57 = vmul.f32 0.01, %v3372_v52  ;;  %v3380_v58 = vsel %vm3374_vm3, %v3371_v49, %v3377_v51 }
 0x303   : > { %v3400_v62 = vmul.f32 %v3388_v55, %v3380_v58 }
 0x304   : > { %v3381_v59 = vsel %vm3375_vm10, %v3372_v52, %v3378_v57 }
 0x305   : > { %v3401_v63 = vmul.f32 %v3392_v56, %v3381_v59 }
 0x307   : > { %v3403_v0 = vadd.f32 %v3401_v63, %v3400_v62 }
 0x309   : > { %v3406_v2 = vadd.f32 %v3405_v1, %v3403_v0 }
 0x30b   : > { %3407 = vadd.xlane.f32.xlu0 %v3406_v2 }
 0x394   : > { %v3408_v9 = vpop.xlane.xlu0 %3407 }
 0x395   : > { %v3409_v3 = vmul.f32 0.00390625, %v3408_v9 }
 0x397   : > { %3754 = vmatpush3.msra.mxu0 %v3409_v3 }
 0x398   : > { %3756 = vmatmul.mubr.msk.f32.vlgmr.msra.gmra.mxu0 %vm3411_vm12, %v3410_v61 }
 0x458   : > { %v3481_v19 = vpop.f32.mrf.mxu0 }
 0x459   : > { %v3684_v33 = vmul.f32 -1.442695, %v3481_v19 }
 0x45a   : > { %v3757_v4 = vpop.f32.mrf.mxu0 }
 0x45b   : > { %3791 = vpow2.f32 %v3684_v33 }
 0x468   : > { %v3792_v5 = vpop.eup %3791 }
 0x469   : > { %v3488_v6 = vadd.f32 1.0, %v3792_v5 }
 0x46b   : > { %3793 = vrcp.f32 %v3488_v6 }
 0x478   : > { %v3794_v7 = vpop.eup %3793 }
 0x479   : > { %3493 = vperm.xlu1 %3788, %v3794_v7  }
 0x4f4   : > { %v3494_v8 = vpop.permute.xlu1 %3493 }
 0x4f5   : > { %v3496_v10 = vmul.f32 %v3494_v8, %v3400_v62  ;;  %v3497_v11 = vmul.f32 %v3494_v8, %v3401_v63  ;;  %v3498_v12 = vmul.f32 %v3494_v8, %v3402_v60 }
 0x4f7   : > { %v3499_v13 = vmul.f32 0.999995, %v3496_v10  ;;  %v3500_v14 = vmul.f32 0.999995, %v3497_v11  ;;  %v3501_v15 = vmul.f32 0.999995, %v3498_v12 }
 0x4f9   : > { %3502 = vst [vmem:[%s305_s17] sm:$0xff] %v3499_v13  ;;  %3503 = vst [vmem:[%s305_s17 + $0x8] sm:$0xff] %v3500_v14 }
 0x4fa   : > { %3504 = vst.msk [vmem:[%s305_s17 + $0x10] sm:$0xff] %vm3404_vm11, %v3501_v15 }
 0x4fb PF: > { %s18_s27 = sadd.s32 1, %s3801_s27  }
 0x4fc   : > { %p15_p4 = scmp.ge.s32.totalorder %s18_s27, 4  }
 0x4fe   :  { %17 = sbr.rel (!%p15_p4) target bundleno = 1 (0x1), region = 98 }

</bundles_post_ra>
